<compile_context>
chip_gen: v7x
topology: tpu7x:2x2x1
jax: 0.10.0
libtpu: 0.0.40
codegen_flags: <defaults>
</compile_context>

<pallas_src>
import jax
import jax.numpy as jnp
from jax import lax
from jax.experimental import pallas as pl
from jax.experimental.pallas import tpu as pltpu

Z_DIM = 32
BATCH = 8
C, H, W = 4, 8, 8
FEAT = C * H * W          # 256

ZP = 128                  # z_dim padded to one lane tile (kernel-internal only)
TK = 128                  # FEAT tile -> K grid axis (raise FEAT, keep TK, for real sizes)


# ---------------------------------------------------------------- kernel ----
def _fused_curl_kernel(xa_ref, xt_ref, ew_ref, eb_ref, w_ref,
                       za_ref, zt_ref, logits_ref, acc_ref):
    """One K-step of the fused CURL forward (encoders + logit_conversion)."""
    k = pl.program_id(0)
    b = za_ref.shape[0]        # batch (static)
    zd = za_ref.shape[1]       # z_dim (static)

    @pl.when(k == 0)
    def _init():
        acc_ref[...] = jnp.zeros_like(acc_ref)

    # Both encoders in ONE MXU sequence: stack anchor/target rows (fills the
    # 16-sublane bf16 tile exactly) against column-concatenated weights.
    # bf16 cast happens here (VPU, free) so x is only ever read from HBM as f32.
    x_all = jnp.concatenate([xa_ref[...], xt_ref[...]], axis=0).astype(jnp.bfloat16)
    acc_ref[...] += jnp.dot(x_all, ew_ref[...], preferred_element_type=jnp.float32)

    @pl.when(k == pl.num_programs(0) - 1)
    def _finalize():
        z_all = acc_ref[...] + eb_ref[...]            # (2B, 2*ZP) f32
        z_a = z_all[0:b, 0:ZP]                        # lane-tile-aligned slices
        z_t = z_all[b:2 * b, ZP:2 * ZP]
        za_ref[...] = z_a[:, :zd]                     # unpadded (B, z_dim) out
        zt_ref[...] = z_t[:, :zd]

        # logits = (z_a @ W) @ z_t^T, contracting z on BOTH operands -> no
        # transpose, stays on the MXU.  Padded z lanes are exact zeros (weights
        # and bias zero-padded at init), so the ZP-wide contraction equals the
        # z_dim-wide one and no masking is needed for the row max.
        a = jnp.dot(z_a, w_ref[...], preferred_element_type=jnp.float32)   # (B, ZP)
        logits = lax.dot_general(
            a, z_t, dimension_numbers=(((1,), (1,)), ((), ())),
            preferred_element_type=jnp.float32)                            # (B, B)
        logits_ref[...] = logits - jnp.max(logits, axis=1, keepdims=True)


# --------------------------------------------------------------- wrapper ----
class CurlPallas:
    """JAX/Pallas port of curl/Actor_critic.py::Curl (fused hot path)."""

    def __init__(self, z_dim, batch_size, key):
        assert z_dim <= ZP
        k1, k2, k3, k4, k5 = jax.random.split(key, 5)
        scale = 1.0 / jnp.sqrt(jnp.float32(FEAT))
        # synthetic encoder / encoder_target parameters (external deps in torch)
        enc_w = jax.random.uniform(k1, (FEAT, z_dim), jnp.float32, -scale, scale)
        enc_b = jax.random.uniform(k2, (1, z_dim), jnp.float32, -scale, scale)
        tgt_w = jax.random.uniform(k3, (FEAT, z_dim), jnp.float32, -scale, scale)
        tgt_b = jax.random.uniform(k4, (1, z_dim), jnp.float32, -scale, scale)
        # nn.Parameter(torch.zeros(z_dim, z_dim)); random init here so the
        # kernel path is exercised non-trivially (zeros => logits == 0).
        weights = jax.random.normal(k5, (z_dim, z_dim), jnp.float32) * 0.1

        # torch-parity views (used by the reference check)
        self.enc_w = enc_w.astype(jnp.bfloat16)
        self.enc_b = enc_b
        self.enc_tgt_w = tgt_w.astype(jnp.bfloat16)
        self.enc_tgt_b = tgt_b
        self.weights = weights

        # Kernel-side params, built once at init (zero runtime cost):
        # anchor/target encoder weights concatenated along columns into
        # lane-tile-aligned slots [0:ZP) / [ZP:2ZP); all padding exact zero so
        # padded z lanes stay zero and never perturb the logits.
        ew = jnp.zeros((FEAT, 2 * ZP), jnp.bfloat16)
        ew = ew.at[:, :z_dim].set(self.enc_w)
        ew = ew.at[:, ZP:ZP + z_dim].set(self.enc_tgt_w)
        eb = jnp.zeros((1, 2 * ZP), jnp.float32)
        eb = eb.at[:, :z_dim].set(enc_b)
        eb = eb.at[:, ZP:ZP + z_dim].set(tgt_b)
        self._enc_w_cat = ew                                     # (FEAT, 2*ZP)
        self._enc_b_cat = eb                                     # (1, 2*ZP)
        self._weights_p = (jnp.zeros((ZP, ZP), jnp.float32)
                           .at[:z_dim, :z_dim].set(weights))     # (ZP, ZP)

        self.z_dim = z_dim
        self.batch_size = batch_size

    def forward_and_logits(self, x_anchor, x_target):
        """Fused forward(x_a), forward(x_t, target=True), logit_conversion()."""
        B = x_anchor.shape[0]
        zd = self.z_dim
        # flatten NCHW row-major like torch .view(B, -1); keep f32 — the bf16
        # cast happens inside the kernel.
        xa = x_anchor.reshape(B, -1)
        xt = x_target.reshape(B, -1)

        k_tiles = FEAT // TK
        flops = (2 * (2 * B) * FEAT * (2 * ZP)        # fused encoder matmul
                 + 2 * B * ZP * ZP                    # z_a @ W
                 + 2 * B * ZP * B)                    # (z_a W) @ z_t^T
        bytes_accessed = (2 * B * FEAT * 4            # xa, xt (f32)
                          + FEAT * 2 * ZP * 2         # concatenated bf16 weights
                          + 2 * ZP * 4                # bias
                          + ZP * ZP * 4               # bilinear W
                          + 2 * B * zd * 4            # z_a, z_t outputs
                          + B * B * 4)                # logits output

        za, zt, logits = pl.pallas_call(
            _fused_curl_kernel,
            out_shape=(
                jax.ShapeDtypeStruct((B, zd), jnp.float32),
                jax.ShapeDtypeStruct((B, zd), jnp.float32),
                jax.ShapeDtypeStruct((B, B), jnp.float32),
            ),
            grid_spec=pltpu.PrefetchScalarGridSpec(
                num_scalar_prefetch=0,
                grid=(k_tiles,),                       # FEAT (reduction) axis last
                in_specs=[
                    pl.BlockSpec((B, TK), lambda k: (0, k)),
                    pl.BlockSpec((B, TK), lambda k: (0, k)),
                    pl.BlockSpec((TK, 2 * ZP), lambda k: (k, 0)),
                    pl.BlockSpec((1, 2 * ZP), lambda k: (0, 0)),
                    pl.BlockSpec((ZP, ZP), lambda k: (0, 0)),
                ],
                out_specs=[
                    pl.BlockSpec((B, zd), lambda k: (0, 0)),
                    pl.BlockSpec((B, zd), lambda k: (0, 0)),
                    pl.BlockSpec((B, B), lambda k: (0, 0)),
                ],
                scratch_shapes=[pltpu.VMEM((2 * B, 2 * ZP), jnp.float32)],
            ),
            compiler_params=pltpu.CompilerParams(
                dimension_semantics=("arbitrary",),
                vmem_limit_bytes=32 * 1024 * 1024),
            cost_estimate=pl.CostEstimate(
                flops=flops, transcendentals=0, bytes_accessed=bytes_accessed),
        )(xa, xt, self._enc_w_cat, self._enc_b_cat, self._weights_p)

        # TODO(synk): custom_vjp needed for the documented grad path through
        # encoder(x_anchor) and W; pallas_call itself has no autodiff rule.
        z_t = lax.stop_gradient(zt)          # mirrors torch.no_grad() on target
        return za, z_t, logits


# ------------------------------------------------------------------ main -----
if __name__ == "__main__":
    key = jax.random.PRNGKey(0)
    k_params, k_xa, k_xt = jax.random.split(key, 3)

    curl = CurlPallas(Z_DIM, BATCH, k_params)
    x_anchor = jax.random.normal(k_xa, (BATCH, C, H, W), jnp.float32)
    x_target = jax.random.normal(k_xt, (BATCH, C, H, W), jnp.float32)

    fused = jax.jit(curl.forward_and_logits)
    z_a, z_t, logits = fused(x_anchor, x_target)
    jax.block_until_ready((z_a, z_t, logits))

    # ---- pure-JAX reference (torch formulation; same bf16 encoder operands) --
    xa_bf = x_anchor.reshape(BATCH, -1).astype(jnp.bfloat16)
    xt_bf = x_target.reshape(BATCH, -1).astype(jnp.bfloat16)
    z_a_ref = jnp.dot(xa_bf, curl.enc_w,
                      preferred_element_type=jnp.float32) + curl.enc_b
    z_t_ref = jnp.dot(xt_bf, curl.enc_tgt_w,
                      preferred_element_type=jnp.float32) + curl.enc_tgt_b
    y_ref = jnp.matmul(curl.weights, z_t_ref.T, precision="highest")
    logits_ref = jnp.matmul(z_a_ref, y_ref, precision="highest")
    logits_ref = logits_ref - jnp.max(logits_ref, axis=1, keepdims=True)

    assert z_a.shape == (BATCH, Z_DIM) and z_t.shape == (BATCH, Z_DIM)
    assert logits.shape == (BATCH, BATCH)
    assert jnp.allclose(z_a, z_a_ref, atol=2e-2, rtol=2e-2)
    assert jnp.allclose(z_t, z_t_ref, atol=2e-2, rtol=2e-2)
    assert jnp.allclose(logits, logits_ref, atol=2e-2, rtol=2e-2)

    print("KERNEL_OK")
</pallas_src>

<mosaic_0001>
module attributes {stable_mosaic.version = 11 : i64} {
  func.func @_fused_curl_kernel(%arg0: i32, %arg1: memref<8x128xf32, #tpu.memory_space<vmem>>, %arg2: memref<8x128xf32, #tpu.memory_space<vmem>>, %arg3: memref<128x256xbf16, #tpu.memory_space<vmem>>, %arg4: memref<1x256xf32, #tpu.memory_space<vmem>>, %arg5: memref<128x128xf32, #tpu.memory_space<vmem>>, %arg6: memref<8x32xf32, #tpu.memory_space<vmem>>, %arg7: memref<8x32xf32, #tpu.memory_space<vmem>>, %arg8: memref<8x8xf32, #tpu.memory_space<vmem>>, %arg9: memref<16x256xf32, #tpu.memory_space<vmem>>) attributes {dimension_semantics = [#tpu.dimension_semantics<arbitrary>], iteration_bounds = array<i64: 2>, scalar_prefetch = 0 : i64, scratch_operands = 1 : i64, tpu.core_type = #tpu.core_type<tc>, window_params = [{transform_indices = @transform_0, window_bounds = array<i64: 8, 128>}, {transform_indices = @transform_1, window_bounds = array<i64: 8, 128>}, {transform_indices = @transform_2, window_bounds = array<i64: 128, 256>}, {pipeline_mode = #tpu.pipeline_mode<synchronous>, transform_indices = @transform_3, window_bounds = array<i64: 1, 256>}, {pipeline_mode = #tpu.pipeline_mode<synchronous>, transform_indices = @transform_4, window_bounds = array<i64: 128, 128>}, {pipeline_mode = #tpu.pipeline_mode<synchronous>, transform_indices = @transform_5, window_bounds = array<i64: 8, 32>}, {pipeline_mode = #tpu.pipeline_mode<synchronous>, transform_indices = @transform_6, window_bounds = array<i64: 8, 32>}, {pipeline_mode = #tpu.pipeline_mode<synchronous>, transform_indices = @transform_7, window_bounds = array<i64: 8, 8>}]} {
    %c0_i32 = arith.constant 0 : i32
    %0 = arith.cmpi eq, %arg0, %c0_i32 : i32
    %1 = arith.extui %0 : i1 to i32
    %c0_i32_0 = arith.constant 0 : i32
    %2 = arith.cmpi ne, %1, %c0_i32_0 : i32
    scf.if %2 {
      %cst_11 = arith.constant 0.000000e+00 : f32
      %15 = vector.broadcast %cst_11 : f32 to vector<16x256xf32>
      %c0_12 = arith.constant 0 : index
      %c0_13 = arith.constant 0 : index
      %16 = vector.load %arg9[%c0_12, %c0_13] : memref<16x256xf32, #tpu.memory_space<vmem>>, vector<16x256xf32>
      tpu.vector_store %arg9[%c0_12, %c0_13], %15 {strides = array<i32>} : memref<16x256xf32, #tpu.memory_space<vmem>>, vector<16x256xf32>,
    } else {
    }
    %c0 = arith.constant 0 : index
    %c0_1 = arith.constant 0 : index
    %3 = vector.load %arg1[%c0, %c0_1] : memref<8x128xf32, #tpu.memory_space<vmem>>, vector<8x128xf32>
    %c0_2 = arith.constant 0 : index
    %c0_3 = arith.constant 0 : index
    %4 = vector.load %arg2[%c0_2, %c0_3] : memref<8x128xf32, #tpu.memory_space<vmem>>, vector<8x128xf32>
    %5 = tpu.concatenate %3, %4 in 0 : vector<8x128xf32>, vector<8x128xf32> -> vector<16x128xf32>
    %6 = arith.truncf %5 : vector<16x128xf32> to vector<16x128xbf16>
    %c0_4 = arith.constant 0 : index
    %c0_5 = arith.constant 0 : index
    %7 = vector.load %arg9[%c0_4, %c0_5] : memref<16x256xf32, #tpu.memory_space<vmem>>, vector<16x256xf32>
    %c0_6 = arith.constant 0 : index
    %c0_7 = arith.constant 0 : index
    %8 = vector.load %arg3[%c0_6, %c0_7] : memref<128x256xbf16, #tpu.memory_space<vmem>>, vector<128x256xbf16>
    %cst = arith.constant dense<0.000000e+00> : vector<16x256xf32>
    %9 = tpu.matmul %6, %8, %cst {dimension_numbers = #tpu.dot_dimension_numbers<[1], [0], [0], [1], [0, 0, 1, 1], [], []>} : vector<16x128xbf16>, vector<128x256xbf16>, vector<16x256xf32> -> vector<16x256xf32>
    %10 = arith.addf %7, %9 : vector<16x256xf32>
    %c0_8 = arith.constant 0 : index
    %c0_9 = arith.constant 0 : index
    %11 = vector.load %arg9[%c0_8, %c0_9] : memref<16x256xf32, #tpu.memory_space<vmem>>, vector<16x256xf32>
    tpu.vector_store %arg9[%c0_8, %c0_9], %10 {strides = array<i32>} : memref<16x256xf32, #tpu.memory_space<vmem>>, vector<16x256xf32>,
    %c1_i32 = arith.constant 1 : i32
    %12 = arith.cmpi eq, %arg0, %c1_i32 : i32
    %13 = arith.extui %12 : i1 to i32
    %c0_i32_10 = arith.constant 0 : i32
    %14 = arith.cmpi ne, %13, %c0_i32_10 : i32
    scf.if %14 {
      %c0_11 = arith.constant 0 : index
      %c0_12 = arith.constant 0 : index
      %15 = vector.load %arg9[%c0_11, %c0_12] : memref<16x256xf32, #tpu.memory_space<vmem>>, vector<16x256xf32>
      %c0_13 = arith.constant 0 : index
      %c0_14 = arith.constant 0 : index
      %16 = vector.load %arg4[%c0_13, %c0_14] : memref<1x256xf32, #tpu.memory_space<vmem>>, vector<1x256xf32>
      %17 = vector.broadcast %16 : vector<1x256xf32> to vector<16x256xf32>
      %18 = arith.addf %15, %17 : vector<16x256xf32>
      %19 = vector.extract_strided_slice %18 {offsets = [0, 0], sizes = [8, 128], strides = [1, 1]} : vector<16x256xf32> to vector<8x128xf32>
      %20 = vector.extract_strided_slice %18 {offsets = [8, 128], sizes = [8, 128], strides = [1, 1]} : vector<16x256xf32> to vector<8x128xf32>
      %21 = vector.extract_strided_slice %19 {offsets = [0, 0], sizes = [8, 32], strides = [1, 1]} : vector<8x128xf32> to vector<8x32xf32>
      %c0_15 = arith.constant 0 : index
      %c0_16 = arith.constant 0 : index
      %22 = vector.load %arg6[%c0_15, %c0_16] : memref<8x32xf32, #tpu.memory_space<vmem>>, vector<8x32xf32>
      tpu.vector_store %arg6[%c0_15, %c0_16], %21 {strides = array<i32>} : memref<8x32xf32, #tpu.memory_space<vmem>>, vector<8x32xf32>,
      %23 = vector.extract_strided_slice %20 {offsets = [0, 0], sizes = [8, 32], strides = [1, 1]} : vector<8x128xf32> to vector<8x32xf32>
      %c0_17 = arith.constant 0 : index
      %c0_18 = arith.constant 0 : index
      %24 = vector.load %arg7[%c0_17, %c0_18] : memref<8x32xf32, #tpu.memory_space<vmem>>, vector<8x32xf32>
      tpu.vector_store %arg7[%c0_17, %c0_18], %23 {strides = array<i32>} : memref<8x32xf32, #tpu.memory_space<vmem>>, vector<8x32xf32>,
      %c0_19 = arith.constant 0 : index
      %c0_20 = arith.constant 0 : index
      %25 = vector.load %arg5[%c0_19, %c0_20] : memref<128x128xf32, #tpu.memory_space<vmem>>, vector<128x128xf32>
      %cst_21 = arith.constant dense<0.000000e+00> : vector<8x128xf32>
      %26 = tpu.matmul %19, %25, %cst_21 {dimension_numbers = #tpu.dot_dimension_numbers<[1], [0], [0], [1], [0, 0, 1, 1], [], []>} : vector<8x128xf32>, vector<128x128xf32>, vector<8x128xf32> -> vector<8x128xf32>
      %cst_22 = arith.constant dense<0.000000e+00> : vector<8x8xf32>
      %27 = tpu.matmul %26, %20, %cst_22 {dimension_numbers = #tpu.dot_dimension_numbers<[1], [1], [0], [0], [0, 0, 1, 0], [], []>} : vector<8x128xf32>, vector<8x128xf32>, vector<8x8xf32> -> vector<8x8xf32>
      %cst_23 = arith.constant dense<0xFF800000> : vector<8xf32>
      %28 = vector.multi_reduction <maximumf>, %27, %cst_23 [1] : vector<8x8xf32> to vector<8xf32>
      %29 = vector.shape_cast %28 : vector<8xf32> to vector<8x1xf32>
      %30 = vector.broadcast %29 : vector<8x1xf32> to vector<8x8xf32>
      %31 = arith.subf %27, %30 : vector<8x8xf32>
      %c0_24 = arith.constant 0 : index
      %c0_25 = arith.constant 0 : index
      %32 = vector.load %arg8[%c0_24, %c0_25] : memref<8x8xf32, #tpu.memory_space<vmem>>, vector<8x8xf32>
      tpu.vector_store %arg8[%c0_24, %c0_25], %31 {strides = array<i32>} : memref<8x8xf32, #tpu.memory_space<vmem>>, vector<8x8xf32>,
    } else {
    }
    return
  }
  func.func @transform_0(%arg0: i32) -> (i32, i32) {
    %c0_i32 = arith.constant 0 : i32
    %c0_i32_0 = arith.constant 0 : i32
    return %c0_i32, %arg0 : i32, i32
  }
  func.func @transform_1(%arg0: i32) -> (i32, i32) {
    %c0_i32 = arith.constant 0 : i32
    %c0_i32_0 = arith.constant 0 : i32
    return %c0_i32, %arg0 : i32, i32
  }
  func.func @transform_2(%arg0: i32) -> (i32, i32) {
    %c0_i32 = arith.constant 0 : i32
    %c0_i32_0 = arith.constant 0 : i32
    return %arg0, %c0_i32 : i32, i32
  }
  func.func @transform_3(%arg0: i32) -> (i32, i32) {
    %c0_i32 = arith.constant 0 : i32
    %c0_i32_0 = arith.constant 0 : i32
    %c0_i32_1 = arith.constant 0 : i32
    return %c0_i32, %c0_i32_0 : i32, i32
  }
  func.func @transform_4(%arg0: i32) -> (i32, i32) {
    %c0_i32 = arith.constant 0 : i32
    %c0_i32_0 = arith.constant 0 : i32
    %c0_i32_1 = arith.constant 0 : i32
    return %c0_i32, %c0_i32_0 : i32, i32
  }
  func.func @transform_5(%arg0: i32) -> (i32, i32) {
    %c0_i32 = arith.constant 0 : i32
    %c0_i32_0 = arith.constant 0 : i32
    %c0_i32_1 = arith.constant 0 : i32
    return %c0_i32, %c0_i32_0 : i32, i32
  }
  func.func @transform_6(%arg0: i32) -> (i32, i32) {
    %c0_i32 = arith.constant 0 : i32
    %c0_i32_0 = arith.constant 0 : i32
    %c0_i32_1 = arith.constant 0 : i32
    return %c0_i32, %c0_i32_0 : i32, i32
  }
  func.func @transform_7(%arg0: i32) -> (i32, i32) {
    %c0_i32 = arith.constant 0 : i32
    %c0_i32_0 = arith.constant 0 : i32
    %c0_i32_1 = arith.constant 0 : i32
    return %c0_i32, %c0_i32_0 : i32, i32
  }
}

</mosaic_0001>

<bundles_post_ra>
// kernel: forward_and_logits.1
= control target key start
LH: loop header
LB: loop body
LE: loop exit
PB: predicated region body
PF: predicated region fallthrough
CT: control target
= control target key end

     0   :  { %13 = vsyncpa [#allocation4], 0  ;;  %s1245_s0 = inlined_call_operand.vmem [shape: f32[8,256], index: 0, kind: input, shape index: {}]   ;;  %s1246_s1 = inlined_call_operand.vmem [shape: f32[8,256], index: 1, kind: input, shape index: {}]   ;;  %s1247_s2 = inlined_call_operand.vmem [shape: bf16[256,256], index: 2, kind: input, shape index: {}]   ;;  %s1248_s3 = inlined_call_operand.vmem [shape: f32[1,256], index: 3, kind: input, shape index: {}]   ;;  %s1249_s4 = inlined_call_operand.vmem [shape: f32[128,128], index: 4, kind: input, shape index: {}]   ;;  %s1250_s5 = inlined_call_operand.hbm [shape: f32[8,32], index: 5, kind: output, shape index: {0}]   ;;  %s1251_s6 = inlined_call_operand.hbm [shape: f32[8,32], index: 6, kind: output, shape index: {1}]   ;;  %s1252_s7 = inlined_call_operand.hbm [shape: f32[8,8], index: 7, kind: output, shape index: {2}]  }
   0x1   :  { %14 = vsyncpa [#allocation6], 0  ;;  %s1080_s24 = smov 0  }
   0x2 LB: > { %s1086_s25 = sadd.s32 4294967295, %s1030_s24   ;;  %p764_p0 = scmp.ge.s32.totalorder %s1030_s24, 1  ;;  %s1030_s24 = sphi %s1080_s24, %s20_s24  }
   0x3   : > { %p249_p1 = scmp.lt.s32.totalorder %s1030_s24, 3 }
   0x5   : > { %p250_p2 = pnand %p764_p0, %p249_p1 }
   0x6   : > { %p285_p3 = scmp.lt.s32.totalorder (!%p250_p2), %s1086_s25, 1  ;;  %s767_s26 = sshll.u32 (!%p250_p2), %s1086_s25, 4 }
   0x7   : > { %253 = sbr.rel (%p250_p2) target bundleno = 920 (0x398), region = 40  ;;  %p294_p4 = scmp.lt.s32.totalorder (!%p250_p2), %s767_s26, 31 }
   0x8   : > { %p770_p5 = scmp.ne.s32.totalorder (!%p250_p2), %s1086_s25, 0 }
   0xe   : > { %s286_s27 = scalar_select %p285_p3, %s1086_s25, 1 }
   0xf   : > { %s1254_s26 = smov (!%p294_p4, %s767_s26), 31  ;;  %304 = sbr.rel (%p770_p5) target bundleno = 22 (0x16), region = 44 }
  0x10   : > { %s765_s28 = sshll.u32 %s286_s27, 3  ;;  %s796_s12 = sshll.u32 %s1254_s26, 3  ;;  %v1032_v0 = vmov (!%p770_p5), 0.0  }
  0x11   : > { %s1096_s8 = scalar_lea.vmem %s1245_s0, %s765_s28  ;;  %s1101_s11 = scalar_lea.vmem %s1246_s1, %s765_s28  ;;  %305 = vst [vmem:[#allocation2] sm:$0xff] (!%p770_p5), %v1032_v0  ;;  %306 = vst [vmem:[#allocation2 + $0x8] sm:$0xff] (!%p770_p5), %v1032_v0 }
  0x12   : > { %s1106_s15 = scalar_lea.vmem %s1247_s2, %s796_s12  ;;  %307 = vst [vmem:[#allocation2 + $0x10] sm:$0xff] (!%p770_p5), %v1032_v0  ;;  %308 = vst [vmem:[#allocation2 + $0x18] sm:$0xff] (!%p770_p5), %v1032_v0 }
  0x16 PF: > { %v914_v1 = vld [vmem:[%s1106_s15 + $0x4] ss:$8 sps:$4 sm:$0xff]   ;;  %v916_v2 = vld [vmem:[%s1106_s15] ss:$8 sps:$4 sm:$0xff]   ;;  %v1033_v3 = vmov 0   ;;  %p787_p6 = scmp.ne.s32.totalorder %s1086_s25, 1 }
  0x17   : > { %444 = vmatprep.mubr.bf16.mxu0 %v1033_v3  ;;  %412 = vmatprep.subr.bf16.mxu0 %v914_v1  ;;  %v917_v4 = vld [vmem:[%s1106_s15 + $0x14] ss:$8 sps:$4 sm:$0xff]   ;;  %v919_v5 = vld [vmem:[%s1106_s15 + $0x10] ss:$8 sps:$4 sm:$0xff]   ;;  %v920_v6 = vld [vmem:[%s1106_s15 + $0x24] ss:$8 sps:$4 sm:$0xff]   ;;  %v471_v36 = vlaneseq (!%p787_p6) }
  0x18   : > { %413 = vmatpush1.bf16.msra.mxu0 %v916_v2  ;;  %v922_v7 = vld [vmem:[%s1106_s15 + $0x20] ss:$8 sps:$4 sm:$0xff]   ;;  %v923_v8 = vld [vmem:[%s1106_s15 + $0x34] ss:$8 sps:$4 sm:$0xff]   ;;  %v925_v9 = vld [vmem:[%s1106_s15 + $0x30] ss:$8 sps:$4 sm:$0xff]  }
  0x19   : > { %414 = vmatprep.subr.bf16.mxu0 %v917_v4  ;;  %v926_v10 = vld [vmem:[%s1106_s15 + $0x44] ss:$8 sps:$4 sm:$0xff]   ;;  %v928_v11 = vld [vmem:[%s1106_s15 + $0x40] ss:$8 sps:$4 sm:$0xff]   ;;  %v929_v12 = vld [vmem:[%s1106_s15 + $0x54] ss:$8 sps:$4 sm:$0xff]  }
  0x1a   : > { %v931_v13 = vld [vmem:[%s1106_s15 + $0x50] ss:$8 sps:$4 sm:$0xff]   ;;  %v932_v14 = vld [vmem:[%s1106_s15 + $0x64] ss:$8 sps:$4 sm:$0xff]   ;;  %v934_v15 = vld [vmem:[%s1106_s15 + $0x60] ss:$8 sps:$4 sm:$0xff]  }
  0x1b   : > { %v935_v16 = vld [vmem:[%s1106_s15 + $0x74] ss:$8 sps:$4 sm:$0xff]   ;;  %v937_v17 = vld [vmem:[%s1106_s15 + $0x70] ss:$8 sps:$4 sm:$0xff]   ;;  %v309_v18 = vld [vmem:[%s1096_s8] sm:$0xff]  ;;  %v1034_v37 = vmov (!%p787_p6), 0.0|0.0  }
  0x1c   : > { %415 = vmatpush1.bf16.msra.mxu0 %v919_v5  ;;  %v310_v19 = vld [vmem:[%s1101_s11] sm:$0xff]  ;;  %v313_v22 = vld [vmem:[#allocation2 + $0x8] sm:$0xff]  ;;  %v314_v24 = vld [vmem:[#allocation2 + $0x10] sm:$0xff]  ;;  %vm1035_vm0 = vmmov (!%p787_p6), 0   ;;  %v1036_v40 = vmov (!%p787_p6), 0.0   ;;  %v472_v41 = vshrl.u32 (!%p787_p6), %v471_v36, 7 }
  0x1d   : > { %416 = vmatprep.subr.bf16.mxu0 %v920_v6  ;;  %v311_v20 = vpack.c.bf16 %v310_v19, %v309_v18  ;;  %v312_v21 = vld [vmem:[#allocation2] sm:$0xff]  ;;  %v315_v27 = vld [vmem:[#allocation2 + $0x18] sm:$0xff]  ;;  %v487_v34 = vld [vmem:[%s1249_s4 + $0x8] sm:$0xff] (!%p787_p6)  ;;  %851 = vmatprep.subr.mxu1 (!%p787_p6), %v1036_v40  ;;  %vm483_vm1 = vcmask (!%p787_p6), 261120   ;;  %vm642_vm2 = vcmask (!%p787_p6), 64512  }
  0x1e   : > { %v486_v33 = vld [vmem:[%s1249_s4] sm:$0xff] (!%p787_p6)  ;;  %v488_v35 = vld [vmem:[%s1249_s4 + $0x10] sm:$0xff] (!%p787_p6)  ;;  %v489_v39 = vld [vmem:[%s1249_s4 + $0x18] sm:$0xff] (!%p787_p6)  ;;  %853 = vmatprep.mubr.msk.f32.mxu1 (!%p787_p6), %vm1035_vm0, %v1036_v40  ;;  %v473_v45 = vsub.s32 (!%p787_p6), 0, %v472_v41  ;;  %v477_v46 = vsub.s32 (!%p787_p6), 1, %v472_v41 }
  0x1f   : > { %v857_v38 = vpack.c.bf16 (!%p787_p6), %v487_v34, %v486_v33  ;;  %v860_v42 = vpack.c.bf16 (!%p787_p6), %v489_v39, %v488_v35  ;;  %v490_v43 = vld [vmem:[%s1249_s4 + $0x20] sm:$0xff] (!%p787_p6)  ;;  %v491_v44 = vld [vmem:[%s1249_s4 + $0x28] sm:$0xff] (!%p787_p6)  ;;  %v492_v53 = vld [vmem:[%s1249_s4 + $0x30] sm:$0xff] (!%p787_p6) }
  0x20   : > { %417 = vmatpush1.bf16.msra.mxu0 %v922_v7  ;;  %v469_v48 = vld [vmem:[%s1248_s3] sm:$0x3] (!%p787_p6)  ;;  %v863_v52 = vpack.c.bf16 (!%p787_p6), %v491_v44, %v490_v43  ;;  %v493_v54 = vld [vmem:[%s1249_s4 + $0x38] sm:$0xff] (!%p787_p6)  ;;  %v495_v59 = vld [vmem:[%s1249_s4 + $0x48] sm:$0xff] (!%p787_p6) }
  0x21   : > { %418 = vmatprep.subr.bf16.mxu0 %v923_v8  ;;  %v474_v49 = vrot.slane (!%p787_p6), %v469_v48, %v473_v45  ;;  %v478_v51 = vrot.slane (!%p787_p6), %v469_v48, %v477_v46  ;;  %v866_v57 = vpack.c.bf16 (!%p787_p6), %v493_v54, %v492_v53  ;;  %v494_v58 = vld [vmem:[%s1249_s4 + $0x40] sm:$0xff] (!%p787_p6)  ;;  %v496_v61 = vld [vmem:[%s1249_s4 + $0x50] sm:$0xff] (!%p787_p6)  ;;  %v497_v62 = vld [vmem:[%s1249_s4 + $0x58] sm:$0xff] (!%p787_p6) }
  0x22   : > { %v869_v60 = vpack.c.bf16 (!%p787_p6), %v495_v59, %v494_v58  ;;  %v872_v63 = vpack.c.bf16 (!%p787_p6), %v497_v62, %v496_v61  ;;  %v498_v0 = vld [vmem:[%s1249_s4 + $0x60] sm:$0xff] (!%p787_p6)  ;;  %v499_v1 = vld [vmem:[%s1249_s4 + $0x68] sm:$0xff] (!%p787_p6)  ;;  %v500_v3 = vld [vmem:[%s1249_s4 + $0x70] sm:$0xff] (!%p787_p6) }
  0x23   : > { %v875_v2 = vpack.c.bf16 (!%p787_p6), %v499_v1, %v498_v0  ;;  %v501_v4 = vld [vmem:[%s1249_s4 + $0x78] sm:$0xff] (!%p787_p6) }
  0x24   : > { %419 = vmatpush1.bf16.msra.mxu0 %v925_v9  ;;  %v878_v5 = vpack.c.bf16 (!%p787_p6), %v501_v4, %v500_v3 }
  0x25   : > { %420 = vmatprep.subr.bf16.mxu0 %v926_v10 }
  0x28   : > { %421 = vmatpush1.bf16.msra.mxu0 %v928_v11 }
  0x29   : > { %422 = vmatprep.subr.bf16.mxu0 %v929_v12 }
  0x2c   : > { %423 = vmatpush1.bf16.msra.mxu0 %v931_v13 }
  0x2d   : > { %424 = vmatprep.subr.bf16.mxu0 %v932_v14 }
  0x30   : > { %425 = vmatpush1.bf16.msra.mxu0 %v934_v15 }
  0x31   : > { %426 = vmatprep.subr.bf16.mxu0 %v935_v16 }
  0x34   : > { %427 = vmatpush1.bf16.msra.mxu0 %v937_v17 }
  0x35   : > { %856 = vmatprep.subr.bf16.mxu0 (!%p787_p6), %v1034_v37 }
  0x37   : > { %445 = vmatmul.mubr.bf16.vlgmr.msra.gmra.mrb[0].mxu0 %v311_v20 }
  0x38   : > { %848 = vmatprep.mubr.msk.f32.mxu0 (!%p787_p6), %vm1035_vm0, %v1036_v40  ;;  %858 = vmatpush3.bf16.msra.mxu0 (!%p787_p6), %v857_v38 }
  0x39   : > { %859 = vmatprep.subr.bf16.mxu0 (!%p787_p6), %v1034_v37 }
  0x3c   : > { %861 = vmatpush3.bf16.msra.mxu0 (!%p787_p6), %v860_v42 }
  0x3d   : > { %862 = vmatprep.subr.bf16.mxu0 (!%p787_p6), %v1034_v37 }
  0x40   : > { %864 = vmatpush3.bf16.msra.mxu0 (!%p787_p6), %v863_v52 }
  0x41   : > { %865 = vmatprep.subr.bf16.mxu0 (!%p787_p6), %v1034_v37 }
  0x44   : > { %867 = vmatpush3.bf16.msra.mxu0 (!%p787_p6), %v866_v57 }
  0x45   : > { %868 = vmatprep.subr.bf16.mxu0 (!%p787_p6), %v1034_v37 }
  0x48   : > { %870 = vmatpush3.bf16.msra.mxu0 (!%p787_p6), %v869_v60 }
  0x49   : > { %871 = vmatprep.subr.bf16.mxu0 (!%p787_p6), %v1034_v37 }
  0x4c   : > { %873 = vmatpush3.bf16.msra.mxu0 (!%p787_p6), %v872_v63 }
  0x4d   : > { %874 = vmatprep.subr.bf16.mxu0 (!%p787_p6), %v1034_v37 }
  0x50   : > { %876 = vmatpush3.bf16.msra.mxu0 (!%p787_p6), %v875_v2 }
  0x51   : > { %877 = vmatprep.subr.bf16.mxu0 (!%p787_p6), %v1034_v37 }
  0x54   : > { %879 = vmatpush3.bf16.msra.mxu0 (!%p787_p6), %v878_v5 }
 0x10a   : > { %v446_v23 = vpop.f32.mrb[0].mxu0  ;;  %466 = sbr.rel (%p787_p6) target bundleno = 849 (0x351), region = 48 }
 0x10b   : > { %v455_v25 = vadd.f32 %v446_v23, %v312_v21  ;;  %v448_v26 = vpop.f32.mrb[1].mxu0 }
 0x10c   : > { %v456_v28 = vadd.f32 %v448_v26, %v313_v22  ;;  %v450_v29 = vpop.f32.mrb[2].mxu0 }
 0x10d   : > { %459 = vst [vmem:[#allocation2] sm:$0xff] %v455_v25  ;;  %v457_v30 = vadd.f32 %v450_v29, %v314_v24  ;;  %v452_v31 = vpop.f32.mrb[3].mxu0 }
 0x10e   : > { %460 = vst [vmem:[#allocation2 + $0x8] sm:$0xff] %v456_v28  ;;  %v458_v32 = vadd.f32 %v452_v31, %v315_v27 }
 0x10f   : > { %461 = vst [vmem:[#allocation2 + $0x10] sm:$0xff] %v457_v30 }
 0x110   : > { %462 = vst [vmem:[#allocation2 + $0x18] sm:$0xff] %v458_v32 }
 0x114   : > { %v467_v47 = vld [vmem:[#allocation2] sm:$0xff] }
 0x115   : > { %v481_v55 = vadd.f32 %v474_v49, %v467_v47 }
 0x117   : > { %v468_v50 = vld [vmem:[#allocation2 + $0x18] sm:$0xff]  ;;  %484 = vst.msk [vmem:[#allocation3] sm:$0xff] %vm483_vm1, %v481_v55  ;;  %849 = vmatmul.mubr.f32.vlgmr.msra.gmra.mrb[0].mxu0 %v481_v55 }
 0x118   : > { %v482_v56 = vadd.f32 %v478_v51, %v468_v50 }
 0x11a   : > { %485 = vst.msk [vmem:[#allocation5] sm:$0xff] %vm483_vm1, %v482_v56  ;;  %852 = vmatpush3.xpose.msra.mxu1 %v482_v56 }
 0x1ea   : > { %v568_v6 = vpop.f32.mrb[0].mxu0 }
 0x1eb   : > { %v850_v7 = vpop.f32.mrb[1].mxu0  ;;  %854 = vmatmul.mubr.f32.vlgmr.msra.gmra.mrb[0].mxu1 %v568_v6 }
 0x2be   : > { %v638_v8 = vpop.f32.mrb[0].mxu1 }
 0x2bf   : > { %v855_v9 = vpop.f32.mrb[1].mxu1  ;;  %v643_v10 = vsel %vm642_vm2, %v638_v8, -inf }
 0x2c0   : > { %644 = vmax.xlane.f32.xlu0 %v643_v10 }
 0x34d   : > { %v645_v11 = vpop.xlane.xlu0 %644 }
 0x34e   : > { %v646_v12 = vsub.f32 %v638_v8, %v645_v11 }
 0x350   : > { %647 = vst.msk [vmem:[#allocation7] sm:$0xff] %vm642_vm2, %v646_v12 }
 0x351 PF: > { %p892_p7 = scmp.eq.s32.totalorder %s1086_s25, 1  ;;  %s1037_s8 = smov [#allocation5]  }
 0x352   : > { %s666_s9 = sshll.u32 %s1037_s8, 4  ;;  %s1038_s10 = smov [#allocation3]   ;;  %s667_s9 = int_to_ptr.vmem [resolvable:$true] %s666_s9 }
 0x353   : > { %s655_s11 = sshll.u32 %s1038_s10, 4  ;;  %s938_s12 = scalar_lea.vmem %s667_s9, 128  ;;  %s656_s11 = int_to_ptr.vmem [resolvable:$true] %s655_s11 }
 0x354   : > { %p939_p8 = scmp.ne.s32.totalorder %s667_s9, %s938_s12  ;;  %p945_p11 = scmp.lt.s32.totalorder %s667_s9, %s667_s9 }
 0x355   : > { %p946_p12 = scmp.lt.s32.totalorder %s938_s12, %s938_s12 }
 0x356   : > { %p940_p9 = pnand %p939_p8, %p892_p7 }
 0x357   : > { %p947_p13 = por %p946_p12, %p945_p11 }
 0x358   : > { %p941_p10 = pneg %p940_p9 }
 0x35a   : > { %p948_p0 = pnand %p947_p13, %p941_p10 }
 0x35c   : > { %951 = shalt.err (!%p948_p0)
}
 0x35d   : > { %s952_s15 = scalar_lea.hbm %s1251_s6, 128 }
 0x35e   : > { %p953_p1 = scmp.ne.s32.totalorder %s1251_s6, %s952_s15  ;;  %p958_p4 = scmp.lt.u32.totalorder %s952_s15, %s1251_s6 }
 0x360   : > { %p954_p2 = pnand %p953_p1, %p892_p7 }
 0x362   : > { %p955_p3 = pneg %p954_p2 }
 0x364   : > { %p960_p5 = pnand %p958_p4, %p955_p3 }
 0x366   : > { %963 = shalt.err (!%p960_p5)
}
 0x367   : > { %883 = dma.vmem_to_hbm [thread:$0]  (%p892_p7), %s667_s9, 128, %s1251_s6, [#allocation6]  }
 0x368   : > { %s964_s22 = scalar_lea.vmem %s656_s11, 128  ;;  %p971_p10 = scmp.lt.s32.totalorder %s656_s11, %s656_s11 }
 0x369   : > { %p965_p6 = scmp.ne.s32.totalorder %s656_s11, %s964_s22  ;;  %p972_p11 = scmp.lt.s32.totalorder %s964_s22, %s964_s22 }
 0x36b   : > { %p966_p8 = pnand %p965_p6, %p892_p7  ;;  %p973_p12 = por %p972_p11, %p971_p10 }
 0x36d   : > { %p967_p9 = pneg %p966_p8 }
 0x36f   : > { %p974_p13 = pnand %p973_p12, %p967_p9 }
 0x371   : > { %977 = shalt.err (!%p974_p13)
}
 0x372   : > { %s978_s27 = scalar_lea.hbm %s1250_s5, 128 }
 0x373   : > { %p979_p0 = scmp.ne.s32.totalorder %s1250_s5, %s978_s27  ;;  %p984_p3 = scmp.lt.u32.totalorder %s978_s27, %s1250_s5 }
 0x375   : > { %p980_p1 = pnand %p979_p0, %p892_p7 }
 0x377   : > { %p981_p2 = pneg %p980_p1 }
 0x379   : > { %p986_p4 = pnand %p984_p3, %p981_p2 }
 0x37b   : > { %989 = shalt.err (!%p986_p4)
}
 0x37c   : > { %881 = dma.vmem_to_hbm [thread:$0]  (%p892_p7), %s656_s11, 128, %s1250_s5, [#allocation4]  }
 0x37d   : > { %s1039_s12 = smov [#allocation7]  }
 0x37e   : > { %s677_s13 = sshll.u32 %s1039_s12, 4  ;;  %s678_s13 = int_to_ptr.vmem [resolvable:$true] %s677_s13 }
 0x37f   : > { %s990_s14 = scalar_lea.vmem %s678_s13, 128  ;;  %p997_p9 = scmp.lt.s32.totalorder %s678_s13, %s678_s13 }
 0x380   : > { %p991_p5 = scmp.ne.s32.totalorder %s678_s13, %s990_s14  ;;  %p998_p10 = scmp.lt.s32.totalorder %s990_s14, %s990_s14 }
 0x382   : > { %p992_p6 = pnand %p991_p5, %p892_p7  ;;  %p999_p11 = por %p998_p10, %p997_p9 }
 0x384   : > { %p993_p8 = pneg %p992_p6 }
 0x386   : > { %p1000_p12 = pnand %p999_p11, %p993_p8 }
 0x388   : > { %1003 = shalt.err (!%p1000_p12)
}
 0x389   : > { %s1004_s17 = scalar_lea.hbm %s1252_s7, 128 }
 0x38a   : > { %p1005_p13 = scmp.ne.s32.totalorder %s1252_s7, %s1004_s17  ;;  %p1010_p2 = scmp.lt.u32.totalorder %s1004_s17, %s1252_s7 }
 0x38c   : > { %p1006_p0 = pnand %p1005_p13, %p892_p7 }
 0x38e   : > { %p1007_p1 = pneg %p1006_p0 }
 0x390   : > { %p1012_p3 = pnand %p1010_p2, %p1007_p1 }
 0x392   : > { %1015 = shalt.err (!%p1012_p3)
}
 0x393   : > { %885 = dma.vmem_to_hbm [thread:$0]  (%p892_p7), %s678_s13, 128, %s1252_s7, [#allocation6]  }
 0x394   : > { %1021 = dma.done.wait (%p892_p7), [#allocation4], 128  }
 0x395   : > { %1023 = vsyncadd (%p892_p7), [#allocation4], 4294967168 }
 0x396   : > { %1025 = dma.done.wait (%p892_p7), [#allocation6], 256  }
 0x397   : > { %1027 = vsyncadd (%p892_p7), [#allocation6], 4294967040 }
 0x398 PF: > { %s20_s24 = sadd.s32 1, %s1030_s24  }
 0x399   : > { %p17_p4 = scmp.ge.s32.totalorder %s20_s24, 4  }
 0x39b   :  { %19 = sbr.rel (!%p17_p4) target bundleno = 2 (0x2), region = 97 }
 0x3a2   :  { %698 = vsyncpa [#allocation4], 1 }
 0x3a3   :  { %700 = vsyncpa [#allocation4 + $0x1], 1 }
 0x3a4   :  { %701 = vsyncpa [#allocation6], 1 }

</bundles_post_ra>
